<compile_context>
chip_gen: v6e
topology: v6e:2x2x1
jax: 0.10.0
libtpu: 0.0.40
codegen_flags: <defaults>
</compile_context>

<pallas_src>
import jax
import jax.numpy as jnp
from jax.experimental import pallas as pl
from jax.experimental.pallas import tpu as pltpu

HIDDEN = 64


def _round_up(x, m):
    return ((x + m - 1) // m) * m


def _critic_kernel(s_ref, a_ref, w1s_ref, w1a_ref, b1_ref,
                   w2_ref, b2_ref, w3r_ref, b3_ref, o_ref):
    # Layer 1 with fused concat:  x @ W1 == state @ W1[:S] + action @ W1[S:]
    # bf16 operands, f32 accumulation (MXU native).
    h1 = (jnp.dot(s_ref[...], w1s_ref[...], preferred_element_type=jnp.float32)
          + jnp.dot(a_ref[...], w1a_ref[...], preferred_element_type=jnp.float32)
          + b1_ref[...])
    h1 = jnp.maximum(h1, 0.0)                                   # relu(fc1)

    # Layer 2 (MXU, bf16 operands / f32 accumulate).
    h2 = jnp.dot(h1.astype(jnp.bfloat16), w2_ref[...],
                 preferred_element_type=jnp.float32) + b2_ref[...]
    h2 = jnp.maximum(h2, 0.0)                                   # relu(fc2)

    # Layer 3, out_features == 1: VPU multiply + lane reduce (XLU slot has
    # slack) instead of a width-1 MXU matmul.
    q = jnp.sum(h2 * w3r_ref[...], axis=-1, keepdims=True) + b3_ref[...]
    # TODO(synk): lane-dense (1, TB) output (batch on lane axis) needs a
    # sublane->lane relayout; skipped — output bytes are tiny and the review
    # gates this change on a profile.
    o_ref[...] = q.astype(o_ref.dtype)


def critic_forward(state, action, params, *, block_b=2048):
    """state: (B, input_size), action: (B, action_size) -> (B, 1) float32."""
    w1, b1, w2, b2, w3, b3 = params
    B = state.shape[0]
    input_size = state.shape[1]
    action_size = action.shape[1]

    # bf16 MXU operands; biases / final-row weights stay f32 (added/used
    # after the f32 accumulation on the VPU).
    state = state.astype(jnp.bfloat16)
    action = action.astype(jnp.bfloat16)
    w1s = w1[:input_size].astype(jnp.bfloat16)      # (input_size, 64)
    w1a = w1[input_size:].astype(jnp.bfloat16)      # (action_size, 64)
    w2b = w2.astype(jnp.bfloat16)                   # (64, 64)
    b1f = b1.astype(jnp.float32)
    b2f = b2.astype(jnp.float32)
    w3r = w3.reshape(1, HIDDEN).astype(jnp.float32)  # (1, 64) row for VPU layer
    b3f = b3.astype(jnp.float32)

    # Batch tile: multiple of 16 (bf16 sublane packing), large enough to
    # amortize per-grid-step overhead, clamped to the padded batch.
    TB = min(_round_up(block_b, 16), _round_up(B, 16))
    B_pad = _round_up(B, TB)
    if B_pad != B:
        pad = B_pad - B
        state = jnp.pad(state, ((0, pad), (0, 0)))
        action = jnp.pad(action, ((0, pad), (0, 0)))

    grid = (B_pad // TB,)

    def resident(a):
        # Full-array block, same block for every grid step -> stays in VMEM.
        return pl.BlockSpec(a.shape, lambda i: (0,) * a.ndim)

    flops = 2 * B_pad * ((input_size + action_size) * HIDDEN
                         + HIDDEN * HIDDEN + HIDDEN)
    bytes_accessed = (state.size * 2 + action.size * 2          # bf16 inputs
                      + B_pad * 4                                # f32 output
                      + (w1s.size + w1a.size + w2b.size) * 2     # bf16 weights
                      + (b1f.size + b2f.size + w3r.size + b3f.size) * 4)

    out = pl.pallas_call(
        _critic_kernel,
        out_shape=jax.ShapeDtypeStruct((B_pad, 1), jnp.float32),
        grid=grid,
        in_specs=[
            pl.BlockSpec((TB, input_size), lambda i: (i, 0)),    # state tile
            pl.BlockSpec((TB, action_size), lambda i: (i, 0)),   # action tile
            resident(w1s), resident(w1a), resident(b1f),
            resident(w2b), resident(b2f),
            resident(w3r), resident(b3f),
        ],
        out_specs=pl.BlockSpec((TB, 1), lambda i: (i, 0)),
        compiler_params=pltpu.CompilerParams(
            # TODO(synk): on v7x, verify the batch grid actually shards across
            # both TensorCores; if not, use an explicit per-core split.
            dimension_semantics=("parallel",),
            vmem_limit_bytes=32 * 1024 * 1024,
        ),
        cost_estimate=pl.CostEstimate(
            flops=flops, transcendentals=0, bytes_accessed=bytes_accessed),
    )(state, action, w1s, w1a, b1f, w2b, b2f, w3r, b3f)

    return out[:B]


def init_critic_params(key, input_size, action_size, hidden=HIDDEN):
    """PyTorch nn.Linear-style init, stored pre-transposed (in, out)."""
    d_in = input_size + action_size
    k1, k2, k3 = jax.random.split(key, 3)

    def linear(k, fan_in, fan_out):
        bound = 1.0 / jnp.sqrt(jnp.float32(fan_in))
        kw, kb = jax.random.split(k)
        w = jax.random.uniform(kw, (fan_in, fan_out), jnp.float32, -bound, bound)
        b = jax.random.uniform(kb, (1, fan_out), jnp.float32, -bound, bound)
        return w, b

    w1, b1 = linear(k1, d_in, hidden)
    w2, b2 = linear(k2, hidden, hidden)
    w3, b3 = linear(k3, hidden, 1)
    return (w1, b1, w2, b2, w3, b3)


def _reference(state, action, params):
    w1, b1, w2, b2, w3, b3 = params
    x = jnp.concatenate([state, action], axis=1)
    h1 = jnp.maximum(x @ w1 + b1, 0.0)
    h2 = jnp.maximum(h1 @ w2 + b2, 0.0)
    return h2 @ w3 + b3


if __name__ == "__main__":
    input_size, action_size = 16, 4
    key = jax.random.PRNGKey(0)
    k_p, k_data = jax.random.split(key)
    params = init_critic_params(k_p, input_size, action_size)

    # batch=8 (single small tile), 37 (pad-and-slice), 2500 (multi-tile grid
    # with TB=2048 plus padding).
    for batch in (8, 37, 2500):
        k_s, k_a, k_data = jax.random.split(k_data, 3)
        state = jax.random.normal(k_s, (batch, input_size), jnp.float32)
        action = jax.random.normal(k_a, (batch, action_size), jnp.float32)

        q = critic_forward(state, action, params)
        q = jax.block_until_ready(q)

        ref = _reference(state, action, params)
        assert q.shape == (batch, 1)
        err = float(jnp.max(jnp.abs(q - ref)))
        # bf16 MXU operands (f32 accumulation) -> loosened tolerance vs f32 ref.
        assert jnp.allclose(q, ref, atol=5e-2, rtol=5e-2), (
            f"mismatch at batch={batch}: max abs err {err}")

    print("KERNEL_OK")
</pallas_src>

<mosaic_0001>
module attributes {stable_mosaic.version = 11 : i64} {
  func.func @_critic_kernel(%arg0: i32, %arg1: memref<16x16xbf16, #tpu.memory_space<vmem>>, %arg2: memref<16x4xbf16, #tpu.memory_space<vmem>>, %arg3: memref<16x64xbf16, #tpu.memory_space<vmem>>, %arg4: memref<4x64xbf16, #tpu.memory_space<vmem>>, %arg5: memref<1x64xf32, #tpu.memory_space<vmem>>, %arg6: memref<64x64xbf16, #tpu.memory_space<vmem>>, %arg7: memref<1x64xf32, #tpu.memory_space<vmem>>, %arg8: memref<1x64xf32, #tpu.memory_space<vmem>>, %arg9: memref<1x1xf32, #tpu.memory_space<vmem>>, %arg10: memref<16x1xf32, #tpu.memory_space<vmem>>) attributes {dimension_semantics = [#tpu.dimension_semantics<parallel>], iteration_bounds = array<i64: 1>, scalar_prefetch = 0 : i64, scratch_operands = 0 : i64, tpu.core_type = #tpu.core_type<tc>, window_params = [{transform_indices = @transform_0, window_bounds = array<i64: 16, 16>}, {transform_indices = @transform_1, window_bounds = array<i64: 16, 4>}, {pipeline_mode = #tpu.pipeline_mode<synchronous>, transform_indices = @transform_2, window_bounds = array<i64: 16, 64>}, {pipeline_mode = #tpu.pipeline_mode<synchronous>, transform_indices = @transform_3, window_bounds = array<i64: 4, 64>}, {pipeline_mode = #tpu.pipeline_mode<synchronous>, transform_indices = @transform_4, window_bounds = array<i64: 1, 64>}, {pipeline_mode = #tpu.pipeline_mode<synchronous>, transform_indices = @transform_5, window_bounds = array<i64: 64, 64>}, {pipeline_mode = #tpu.pipeline_mode<synchronous>, transform_indices = @transform_6, window_bounds = array<i64: 1, 64>}, {pipeline_mode = #tpu.pipeline_mode<synchronous>, transform_indices = @transform_7, window_bounds = array<i64: 1, 64>}, {pipeline_mode = #tpu.pipeline_mode<synchronous>, transform_indices = @transform_8, window_bounds = array<i64: 1, 1>}, {transform_indices = @transform_9, window_bounds = array<i64: 16, 1>}]} {
    %c0 = arith.constant 0 : index
    %c0_0 = arith.constant 0 : index
    %0 = vector.load %arg1[%c0, %c0_0] : memref<16x16xbf16, #tpu.memory_space<vmem>>, vector<16x16xbf16>
    %c0_1 = arith.constant 0 : index
    %c0_2 = arith.constant 0 : index
    %1 = vector.load %arg3[%c0_1, %c0_2] : memref<16x64xbf16, #tpu.memory_space<vmem>>, vector<16x64xbf16>
    %cst = arith.constant dense<0.000000e+00> : vector<16x64xf32>
    %2 = tpu.matmul %0, %1, %cst {dimension_numbers = #tpu.dot_dimension_numbers<[1], [0], [0], [1], [0, 0, 1, 1], [], []>} : vector<16x16xbf16>, vector<16x64xbf16>, vector<16x64xf32> -> vector<16x64xf32>
    %c0_3 = arith.constant 0 : index
    %c0_4 = arith.constant 0 : index
    %3 = vector.load %arg2[%c0_3, %c0_4] : memref<16x4xbf16, #tpu.memory_space<vmem>>, vector<16x4xbf16>
    %c0_5 = arith.constant 0 : index
    %c0_6 = arith.constant 0 : index
    %4 = vector.load %arg4[%c0_5, %c0_6] : memref<4x64xbf16, #tpu.memory_space<vmem>>, vector<4x64xbf16>
    %cst_7 = arith.constant dense<0.000000e+00> : vector<16x64xf32>
    %5 = tpu.matmul %3, %4, %cst_7 {dimension_numbers = #tpu.dot_dimension_numbers<[1], [0], [0], [1], [0, 0, 1, 1], [], []>} : vector<16x4xbf16>, vector<4x64xbf16>, vector<16x64xf32> -> vector<16x64xf32>
    %6 = arith.addf %2, %5 : vector<16x64xf32>
    %c0_8 = arith.constant 0 : index
    %c0_9 = arith.constant 0 : index
    %7 = vector.load %arg5[%c0_8, %c0_9] : memref<1x64xf32, #tpu.memory_space<vmem>>, vector<1x64xf32>
    %8 = vector.broadcast %7 : vector<1x64xf32> to vector<16x64xf32>
    %9 = arith.addf %6, %8 : vector<16x64xf32>
    %cst_10 = arith.constant 0.000000e+00 : f32
    %10 = vector.broadcast %cst_10 : f32 to vector<16x64xf32>
    %11 = arith.maximumf %9, %10 : vector<16x64xf32>
    %12 = arith.truncf %11 : vector<16x64xf32> to vector<16x64xbf16>
    %c0_11 = arith.constant 0 : index
    %c0_12 = arith.constant 0 : index
    %13 = vector.load %arg6[%c0_11, %c0_12] : memref<64x64xbf16, #tpu.memory_space<vmem>>, vector<64x64xbf16>
    %cst_13 = arith.constant dense<0.000000e+00> : vector<16x64xf32>
    %14 = tpu.matmul %12, %13, %cst_13 {dimension_numbers = #tpu.dot_dimension_numbers<[1], [0], [0], [1], [0, 0, 1, 1], [], []>} : vector<16x64xbf16>, vector<64x64xbf16>, vector<16x64xf32> -> vector<16x64xf32>
    %c0_14 = arith.constant 0 : index
    %c0_15 = arith.constant 0 : index
    %15 = vector.load %arg7[%c0_14, %c0_15] : memref<1x64xf32, #tpu.memory_space<vmem>>, vector<1x64xf32>
    %16 = vector.broadcast %15 : vector<1x64xf32> to vector<16x64xf32>
    %17 = arith.addf %14, %16 : vector<16x64xf32>
    %cst_16 = arith.constant 0.000000e+00 : f32
    %18 = vector.broadcast %cst_16 : f32 to vector<16x64xf32>
    %19 = arith.maximumf %17, %18 : vector<16x64xf32>
    %c0_17 = arith.constant 0 : index
    %c0_18 = arith.constant 0 : index
    %20 = vector.load %arg8[%c0_17, %c0_18] : memref<1x64xf32, #tpu.memory_space<vmem>>, vector<1x64xf32>
    %21 = vector.broadcast %20 : vector<1x64xf32> to vector<16x64xf32>
    %22 = arith.mulf %19, %21 : vector<16x64xf32>
    %cst_19 = arith.constant dense<0.000000e+00> : vector<16xf32>
    %23 = vector.multi_reduction <add>, %22, %cst_19 [1] : vector<16x64xf32> to vector<16xf32>
    %24 = vector.shape_cast %23 : vector<16xf32> to vector<16x1xf32>
    %c0_20 = arith.constant 0 : index
    %c0_21 = arith.constant 0 : index
    %25 = vector.load %arg9[%c0_20, %c0_21] : memref<1x1xf32, #tpu.memory_space<vmem>>, vector<1x1xf32>
    %26 = vector.broadcast %25 : vector<1x1xf32> to vector<16x1xf32>
    %27 = arith.addf %24, %26 : vector<16x1xf32>
    %c0_22 = arith.constant 0 : index
    %c0_23 = arith.constant 0 : index
    %28 = vector.load %arg10[%c0_22, %c0_23] : memref<16x1xf32, #tpu.memory_space<vmem>>, vector<16x1xf32>
    tpu.vector_store %arg10[%c0_22, %c0_23], %27 {strides = array<i32>} : memref<16x1xf32, #tpu.memory_space<vmem>>, vector<16x1xf32>,
    return
  }
  func.func @transform_0(%arg0: i32) -> (i32, i32) {
    %c0_i32 = arith.constant 0 : i32
    %c0_i32_0 = arith.constant 0 : i32
    return %arg0, %c0_i32 : i32, i32
  }
  func.func @transform_1(%arg0: i32) -> (i32, i32) {
    %c0_i32 = arith.constant 0 : i32
    %c0_i32_0 = arith.constant 0 : i32
    return %arg0, %c0_i32 : i32, i32
  }
  func.func @transform_2(%arg0: i32) -> (i32, i32) {
    %c0_i32 = arith.constant 0 : i32
    %c0_i32_0 = arith.constant 0 : i32
    %c0_i32_1 = arith.constant 0 : i32
    return %c0_i32, %c0_i32_0 : i32, i32
  }
  func.func @transform_3(%arg0: i32) -> (i32, i32) {
    %c0_i32 = arith.constant 0 : i32
    %c0_i32_0 = arith.constant 0 : i32
    %c0_i32_1 = arith.constant 0 : i32
    return %c0_i32, %c0_i32_0 : i32, i32
  }
  func.func @transform_4(%arg0: i32) -> (i32, i32) {
    %c0_i32 = arith.constant 0 : i32
    %c0_i32_0 = arith.constant 0 : i32
    %c0_i32_1 = arith.constant 0 : i32
    return %c0_i32, %c0_i32_0 : i32, i32
  }
  func.func @transform_5(%arg0: i32) -> (i32, i32) {
    %c0_i32 = arith.constant 0 : i32
    %c0_i32_0 = arith.constant 0 : i32
    %c0_i32_1 = arith.constant 0 : i32
    return %c0_i32, %c0_i32_0 : i32, i32
  }
  func.func @transform_6(%arg0: i32) -> (i32, i32) {
    %c0_i32 = arith.constant 0 : i32
    %c0_i32_0 = arith.constant 0 : i32
    %c0_i32_1 = arith.constant 0 : i32
    return %c0_i32, %c0_i32_0 : i32, i32
  }
  func.func @transform_7(%arg0: i32) -> (i32, i32) {
    %c0_i32 = arith.constant 0 : i32
    %c0_i32_0 = arith.constant 0 : i32
    %c0_i32_1 = arith.constant 0 : i32
    return %c0_i32, %c0_i32_0 : i32, i32
  }
  func.func @transform_8(%arg0: i32) -> (i32, i32) {
    %c0_i32 = arith.constant 0 : i32
    %c0_i32_0 = arith.constant 0 : i32
    %c0_i32_1 = arith.constant 0 : i32
    return %c0_i32, %c0_i32_0 : i32, i32
  }
  func.func @transform_9(%arg0: i32) -> (i32, i32) {
    %c0_i32 = arith.constant 0 : i32
    %c0_i32_0 = arith.constant 0 : i32
    return %arg0, %c0_i32 : i32, i32
  }
}

</mosaic_0001>

<bundles_post_ra>
// kernel: tpu_custom_call.1
= control target key start
LH: loop header
LB: loop body
LE: loop exit
PB: predicated region body
PF: predicated region fallthrough
CT: control target
= control target key end

     0   :  { %s507_s0 = inlined_call_operand.vmem [shape: bf16[16,16], index: 0, kind: input, shape index: {}]   ;;  %s508_s1 = inlined_call_operand.vmem [shape: bf16[16,4], index: 1, kind: input, shape index: {}]   ;;  %s509_s2 = inlined_call_operand.hbm [shape: bf16[16,64], index: 2, kind: input, shape index: {}]   ;;  %s510_s3 = inlined_call_operand.vmem [shape: bf16[4,64], index: 3, kind: input, shape index: {}]   ;;  %s511_s4 = inlined_call_operand.vmem [shape: f32[1,64], index: 4, kind: input, shape index: {}]   ;;  %s512_s5 = inlined_call_operand.hbm [shape: bf16[64,64], index: 5, kind: input, shape index: {}]   ;;  %s513_s6 = inlined_call_operand.vmem [shape: f32[1,64], index: 6, kind: input, shape index: {}]   ;;  %s514_s7 = inlined_call_operand.vmem [shape: f32[1,64], index: 7, kind: input, shape index: {}]   ;;  %s515_s8 = inlined_call_operand.<no memory space> [shape: f32[1,1], index: 8, kind: input, shape index: {}]   ;;  %s516_s9 = inlined_call_operand.vmem [shape: f32[16,1], index: 9, kind: output, shape index: {}]  }
   0x1   :  { %v14_v0 = vstv %s515_s8 }
   0x2   :  { %15 = vst [vmem:[#allocation2] sm:$0x1] %v14_v0 }
   0x3   :  { %16 = vsyncpa [#allocation4], 0 }
   0x4   :  { %17 = vsyncpa [#allocation6], 0  ;;  %s415_s11 = smov [#allocation3]  }
   0x5   :  { %s27_s12 = sshll.u32 %s415_s11, 4  ;;  %s28_s12 = int_to_ptr.vmem [resolvable:$true] %s27_s12 }
   0x6   :  { %s379_s13 = scalar_lea.vmem %s28_s12, 128  ;;  %p384_p1 = scmp.lt.s32.totalorder %s28_s12, %s28_s12 }
   0x7   :  { %p380_p0 = scmp.ne.s32.totalorder %s28_s12, %s379_s13  ;;  %p385_p2 = scmp.lt.s32.totalorder %s379_s13, %s379_s13 }
   0x9   :  { %p386_p3 = por %p385_p2, %p384_p1 }
   0xb   :  { %p387_p4 = pnand %p386_p3, %p380_p0 }
   0xd   :  { %390 = shalt.err (!%p387_p4)
}
   0xe   :  { %s416_s14 = smov 64   ;;  %s417_s15 = smov 4  }
   0xf   :  { %33 = dma.hbm_to_vmem [thread:$0]  %s509_s2, 128, %s28_s12, [#allocation4], %s416_s14, %s416_s14, %s417_s15  }
  0x10   :  { %s418_s8 = smov [#allocation5]  }
  0x11   :  { %s43_s18 = sshll.u32 %s418_s8, 4  ;;  %s44_s18 = int_to_ptr.vmem [resolvable:$true] %s43_s18 }
  0x12   :  { %s399_s19 = scalar_lea.vmem %s44_s18, 512  ;;  %p404_p6 = scmp.lt.s32.totalorder %s44_s18, %s44_s18 }
  0x13   :  { %p400_p5 = scmp.ne.s32.totalorder %s44_s18, %s399_s19  ;;  %p405_p7 = scmp.lt.s32.totalorder %s399_s19, %s399_s19 }
  0x15   :  { %p406_p8 = por %p405_p7, %p404_p6 }
  0x17   :  { %p407_p9 = pnand %p406_p8, %p400_p5 }
  0x19   :  { %410 = shalt.err (!%p407_p9)
}
  0x1a   :  { %49 = dma.hbm_to_vmem [thread:$0]  %s512_s5, 512, %s44_s18, [#allocation6], %s416_s14, %s416_s14, %s417_s15  }
  0x1b   :  { %411 = dma.done.wait [#allocation4], 128  }
  0x1c   :  { %412 = vsyncadd [#allocation4], 4294967168 }
  0x1d   :  { %413 = dma.done.wait [#allocation6], 512  }
  0x1e   :  { %414 = vsyncadd [#allocation6], 4294966784  ;;  %v419_v1 = vmov 0.0   ;;  %vm420_vm0 = vmmov 0   ;;  %vm79_vm1 = vcmask 1041408   ;;  %v364_v4 = vld [vmem:[%s508_s1] sm:$0xff]  }
  0x1f   :  { %334 = vmatprep.subr.bf16.mxu1 %v419_v1  ;;  %336 = vmatprep.mubr.msk.bf16.mxu1 %vm420_vm0, %v419_v1  ;;  %v69_v2 = vld [vmem:[%s510_s3] sm:$0x3]  ;;  %vm75_vm2 = vcmask 31744   ;;  %vm135_vm3 = vcmask 130048   ;;  %v369_v9 = vld [vmem:[#allocation5 + $0x8] sm:$0xff]   ;;  %v370_v10 = vld [vmem:[#allocation5] sm:$0xff]  }
  0x20   :  { %346 = vmatprep.subr.bf16.mxu0 %v419_v1  ;;  %354 = vmatprep.mubr.msk.bf16.mxu0 %vm420_vm0, %v419_v1  ;;  %v81_v3 = vsel %vm79_vm1, %v69_v2, 0  ;;  %v365_v5 = vld [vmem:[#allocation3] sm:$0xff]   ;;  %v368_v8 = vld [vmem:[#allocation5 + $0x10] sm:$0xff]   ;;  %vm231_vm4 = vcmask 523264   ;;  %vm302_vm5 = vcmask 7168  }
  0x21   :  { %335 = vmatpush3.bf16.msra.mxu1 %v81_v3  ;;  %v366_v6 = vld [vmem:[%s507_s0] sm:$0xff]  }
  0x22   :  { %340 = vmatprep.subr.bf16.mxu1 %v419_v1  ;;  %v367_v7 = vld [vmem:[#allocation5 + $0x18] sm:$0xff]   ;;  %v316_v17 = vld [vmem:[%s511_s4] ss:$0 sm:$0xff] }
  0x23   :  { %347 = vmatpush3.bf16.msra.mxu0 %v367_v7  ;;  %v317_v27 = vld [vmem:[%s513_s6] ss:$0 sm:$0xff] }
  0x24   :  { %337 = vmatmul.mubr.msk.bf16.vlgmr.msra.gmra.mxu1 %vm75_vm2, %v364_v4  ;;  %348 = vmatprep.subr.bf16.mxu0 %v419_v1  ;;  %v323_v31 = vld [vmem:[%s514_s7] ss:$0 sm:$0xff] }
  0x25   :  { %341 = vmatpush3.bf16.msra.mxu1 %v365_v5  ;;  %342 = vmatprep.mubr.msk.bf16.mxu1 %vm420_vm0, %v419_v1  ;;  %v324_v41 = vld [vmem:[#allocation2] ss:$0 sm:$0xff] }
  0x27   :  { %349 = vmatpush3.bf16.msra.mxu0 %v368_v8 }
  0x28   :  { %350 = vmatprep.subr.bf16.mxu0 %v419_v1 }
  0x2b   :  { %351 = vmatpush3.bf16.msra.mxu0 %v369_v9 }
  0x2c   :  { %343 = vmatmul.mubr.msk.bf16.vlgmr.msra.gmra.mxu1 %vm135_vm3, %v366_v6  ;;  %352 = vmatprep.subr.bf16.mxu0 %v419_v1 }
  0x2f   :  { %353 = vmatpush3.bf16.msra.mxu0 %v370_v10 }
  0xe4   :  { %v117_v11 = vpop.f32.mrf.mxu1 }
  0xe6   :  { %v338_v12 = vpop.f32.mrf.mxu1 }
  0xe8   :  { %v120_v13 = vpop.f32.mrf.mxu1 }
  0xea   :  { %v339_v14 = vpop.f32.mrf.mxu1 }
  0xec   :  { %v173_v15 = vpop.f32.mrf.mxu1 }
  0xed   :  { %v174_v16 = vadd.f32 %v173_v15, %v117_v11 }
  0xee   :  { %v344_v18 = vpop.f32.mrf.mxu1 }
  0xef   :  { %v187_v20 = vadd.f32 %v316_v17, %v174_v16 }
  0xf0   :  { %v176_v19 = vpop.f32.mrf.mxu1 }
  0xf1   :  { %v177_v21 = vadd.f32 %v176_v19, %v120_v13  ;;  %v189_v24 = vmax.f32 %v187_v20, 0.0 }
  0xf2   :  { %v345_v22 = vpop.f32.mrf.mxu1 }
  0xf3   :  { %v188_v23 = vadd.f32 %v316_v17, %v177_v21 }
  0xf5   :  { %v190_v25 = vmax.f32 %v188_v23, 0.0 }
  0xf7   :  { %v191_v26 = vpack.c.bf16 %v190_v25, %v189_v24 }
  0xf9   :  { %355 = vmatmul.mubr.msk.bf16.vlgmr.msra.gmra.mxu0 %vm231_vm4, %v191_v26 }
 0x1b9   :  { %v269_v28 = vpop.f32.mrf.mxu0 }
 0x1ba   :  { %v270_v29 = vadd.f32 %v317_v27, %v269_v28 }
 0x1bb   :  { %v356_v30 = vpop.f32.mrf.mxu0 }
 0x1bc   :  { %v276_v32 = vmax.f32 %v270_v29, 0.0 }
 0x1bd   :  { %v272_v33 = vpop.f32.mrf.mxu0 }
 0x1be   :  { %v273_v34 = vadd.f32 %v317_v27, %v272_v33  ;;  %v285_v35 = vmul.f32 %v323_v31, %v276_v32 }
 0x1bf   :  { %v357_v36 = vpop.f32.mrf.mxu0 }
 0x1c0   :  { %v277_v37 = vmax.f32 %v273_v34, 0.0  ;;  %v287_v38 = vsel %vm231_vm4, %v285_v35, 0.0 }
 0x1c1   :  { %288 = vadd.xlane.f32.xlu0 %v287_v38 }
 0x1c2   :  { %v286_v39 = vmul.f32 %v323_v31, %v277_v37 }
 0x1c4   :  { %v290_v40 = vsel %vm231_vm4, %v286_v39, 0.0 }
 0x1c5   :  { %291 = vadd.xlane.f32.xlu0 %v290_v40 }
 0x24a   :  { %v289_v42 = vpop.xlane.xlu0 %288 }
 0x24b   :  { %v300_v43 = vadd.f32 %v324_v41, %v289_v42 }
 0x24d   :  { %303 = vst.msk [vmem:[%s516_s9] sm:$0xff] %vm302_vm5, %v300_v43 }
 0x24e   :  { %v292_v44 = vpop.xlane.xlu0 %291 }
 0x24f   :  { %v301_v45 = vadd.f32 %v324_v41, %v292_v44 }
 0x251   :  { %304 = vst.msk [vmem:[%s516_s9 + $0x8] sm:$0xff] %vm302_vm5, %v301_v45 }
 0x252   :  { %309 = vsyncpa [#allocation4], 1 }
 0x253   :  { %310 = vsyncpa [#allocation6], 1 }

</bundles_post_ra>
